<compile_context>
chip_gen: v7x
topology: tpu7x:2x2x1
jax: 0.10.0
libtpu: 0.0.40
codegen_flags: <defaults>
</compile_context>

<pallas_src>
import numpy as np
import jax
import jax.numpy as jnp
from jax import lax
from jax.experimental import pallas as pl
from jax.experimental.pallas import tpu as pltpu

D_DIM = 16                   # small test size (production module uses 64)
N_CELLS = D_DIM * D_DIM      # = 256
NOISE_RATE = 0.125


def _pick_tile(dim, pref):
    """Largest tile <= pref that divides `dim` (dims here are powers of two);
    falls back to the full dimension (always legal for BlockSpec)."""
    if dim <= pref:
        return dim
    t = pref
    while t >= 128 and dim % t:
        t //= 2
    return t if (t >= 128 and dim % t == 0) else dim


# ----------------------------------------------------------------------------
# Kernel 1: row-vector GEMV   y(1,N) = x(1,K) @ W(K,N)      (streams W tiles)
# ----------------------------------------------------------------------------
def _gemv_kernel(x_ref, w_ref, o_ref):
    @pl.when(pl.program_id(1) == 0)
    def _():
        o_ref[...] = jnp.zeros_like(o_ref)
    # W tile arrives as bf16 (half the HBM traffic); promote to f32 at the MXU
    # and accumulate in f32.
    o_ref[...] += jnp.dot(x_ref[...], w_ref[...].astype(jnp.float32),
                          preferred_element_type=jnp.float32)


def pallas_rowvec_matmul(x, w, *, tile=1024):
    _, k = x.shape
    k2, n = w.shape
    assert k == k2
    tn = _pick_tile(n, tile)
    tk = _pick_tile(k, tile)
    assert n % tn == 0 and k % tk == 0, (n, tn, k, tk)
    return pl.pallas_call(
        _gemv_kernel,
        out_shape=jax.ShapeDtypeStruct((1, n), jnp.float32),
        grid_spec=pltpu.PrefetchScalarGridSpec(
            num_scalar_prefetch=0,
            grid=(n // tn, k // tk),                       # reduction axis last
            in_specs=[pl.BlockSpec((1, tk), lambda j, kk: (0, kk)),
                      pl.BlockSpec((tk, tn), lambda j, kk: (kk, j))],
            out_specs=pl.BlockSpec((1, tn), lambda j, kk: (0, j))),
        compiler_params=pltpu.CompilerParams(
            dimension_semantics=("parallel", "arbitrary")),
    )(x, w)


# ----------------------------------------------------------------------------
# Kernel 2: transposed row-vector GEMV   y(1,M) = x(1,N) @ W(M,N).T
#           (contracts W's trailing axis; W.T is never materialised in HBM)
# ----------------------------------------------------------------------------
def _gemv_t_kernel(x_ref, w_ref, o_ref):
    @pl.when(pl.program_id(1) == 0)
    def _():
        o_ref[...] = jnp.zeros_like(o_ref)
    o_ref[...] += lax.dot_general(
        x_ref[...], w_ref[...].astype(jnp.float32),
        dimension_numbers=(((1,), (1,)), ((), ())),
        preferred_element_type=jnp.float32)


def pallas_rowvec_matmul_t(x, w, *, tile=1024):
    _, nx = x.shape
    m, n = w.shape
    assert nx == n
    tm = _pick_tile(m, tile)
    tk = _pick_tile(n, tile)
    assert m % tm == 0 and n % tk == 0, (m, tm, n, tk)
    return pl.pallas_call(
        _gemv_t_kernel,
        out_shape=jax.ShapeDtypeStruct((1, m), jnp.float32),
        grid_spec=pltpu.PrefetchScalarGridSpec(
            num_scalar_prefetch=0,
            grid=(m // tm, n // tk),                       # reduction axis last
            in_specs=[pl.BlockSpec((1, tk), lambda i, kk: (0, kk)),
                      pl.BlockSpec((tm, tk), lambda i, kk: (i, kk))],
            out_specs=pl.BlockSpec((1, tm), lambda i, kk: (0, i))),
        compiler_params=pltpu.CompilerParams(
            dimension_semantics=("parallel", "arbitrary")),
    )(x, w)


# ----------------------------------------------------------------------------
# Kernel 3: element-wise filter factors (lane-dense (1,K) rows)
#   omega     = s^2 / (s^2 + alpha)           ( == 1 / (1 + alpha / s^2) )
#   coef      = s * utg / (s^2 + alpha)       ( == omega * utg / s, no div-by-s)
#   omega_sum = sum(omega)
# ----------------------------------------------------------------------------
def _coef_kernel(alpha_ref, s_ref, utg_ref, coef_ref, osum_ref):
    alpha = alpha_ref[0]                 # scalar from SMEM
    s = s_ref[...]                       # (1, K) lane-dense
    s2 = s * s
    denom = s2 + alpha
    omega = s2 / denom
    coef_ref[...] = (s * utg_ref[...]) / denom
    # single tiny (1,1) store per forward; kept in VMEM (proven-clean path)
    osum_ref[...] = jnp.sum(omega, axis=1, keepdims=True)


def pallas_coef(alpha_arr, s_row, utg_row):
    k = s_row.shape[1]
    return pl.pallas_call(
        _coef_kernel,
        out_shape=(jax.ShapeDtypeStruct((1, k), jnp.float32),
                   jax.ShapeDtypeStruct((1, 1), jnp.float32)),
        in_specs=[pl.BlockSpec(memory_space=pltpu.MemorySpace.SMEM),   # alpha
                  pl.BlockSpec(memory_space=pltpu.MemorySpace.VMEM),   # s
                  pl.BlockSpec(memory_space=pltpu.MemorySpace.VMEM)],  # utg
        out_specs=(pl.BlockSpec(memory_space=pltpu.MemorySpace.VMEM),
                   pl.BlockSpec(memory_space=pltpu.MemorySpace.VMEM)),
    )(alpha_arr, s_row, utg_row)


# ----------------------------------------------------------------------------
# Forward pass (re-associated:  f = c_inv @ (vh.T @ coef))
# ----------------------------------------------------------------------------
def iwama_forward(alpha, u, s, g, c_inv, vh, R, *, tile=1024):
    """u:(M,K) bf16, s:(K,) f32, g:(M,) f32, c_inv:(N,N) bf16, vh:(K,N) bf16,
    R:(M,N) bf16.  Returns (f (N,), g_out (M,), omega_sum ())."""
    m, k = u.shape
    g_row = g.reshape(1, m).astype(jnp.float32)
    s_row = s.reshape(1, k).astype(jnp.float32)
    alpha_arr = jnp.reshape(alpha, (1,)).astype(jnp.float32)

    utg = pallas_rowvec_matmul(g_row, u, tile=tile)        # (1,K) = (u.T @ g).T
    coef, osum = pallas_coef(alpha_arr, s_row, utg)        # (1,K), (1,1)
    vtc = pallas_rowvec_matmul(coef, vh, tile=tile)        # (1,N) = (vh.T @ coef).T
    f_row = pallas_rowvec_matmul_t(vtc, c_inv, tile=tile)  # (1,N) = (c_inv @ vtc).T
    gout_row = pallas_rowvec_matmul_t(f_row, R, tile=tile) # (1,M) = (R @ f).T
    return f_row[0], gout_row[0], osum[0, 0]


# ----------------------------------------------------------------------------
# __init__-time parameter construction (NumPy glue, faithful to the PyTorch code)
# ----------------------------------------------------------------------------
def make_circle(d):
    ys, xs = np.meshgrid(np.linspace(-0.5, 0.5, d), np.linspace(-0.5, 0.5, d),
                         indexing="ij")
    return np.sqrt(xs * xs + ys * ys)    # synthetic stand-in for circle_{d}.npy


def build_iwama_params(R, g, circle, noise):
    n = D_DIM * D_DIM
    lap_base = np.array([-4] + [0] * (n - 1))
    circle_flat = circle.flatten()
    mask = np.where((np.abs(circle_flat) < 0.4) & (np.abs(circle_flat) > 0.265))
    c = []
    for i in range(n):
        temp = np.roll(lap_base, i)
        if i % D_DIM != 0:
            temp[i - 1] = 1
        if i % (D_DIM - 1) != 0:      # faithful to the original module
            temp[i + 1] = 1
        if i >= D_DIM:
            temp[i - D_DIM] = 1
        if n > i + D_DIM:
            temp[i + D_DIM] = 1
        temp[mask] = 0
        c.append(temp / D_DIM)
    c_inv = np.linalg.pinv(np.array(c))           # TODO(synk): init-time pinv/svd stay in NumPy
    u, s, vh = np.linalg.svd(np.dot(R, c_inv), full_matrices=False)
    return dict(alpha=np.float64(1.0), u=u, s=s, vh=vh, g=g + noise,
                c_inv=c_inv, R=R)


def reference_forward_np(alpha, u, s, g, c_inv, vh, R):
    """Original IWAMA op order (float64 NumPy)."""
    omega = 1.0 / (1.0 + alpha / (s ** 2))
    coef = omega * (u.T @ g) / s
    matrix = c_inv @ vh.T
    f = matrix @ coef
    g_out = R @ f
    return f, g_out, omega.sum()


# ----------------------------------------------------------------------------
if __name__ == "__main__":
    key = jax.random.PRNGKey(0)
    k_r, k_g, k_n = jax.random.split(key, 3)

    # deterministic synthetic "forward operator" R and data g (float64 host copies)
    R64 = (np.asarray(jax.random.normal(k_r, (N_CELLS, N_CELLS), dtype=jnp.float32),
                      dtype=np.float64) / np.sqrt(N_CELLS))
    g64 = np.asarray(jax.random.uniform(k_g, (N_CELLS,), minval=0.5, maxval=1.5,
                                        dtype=jnp.float32), dtype=np.float64)
    circle = make_circle(D_DIM)
    noise_std = float(np.mean(g64)) * NOISE_RATE
    noise64 = (np.asarray(jax.random.normal(k_n, (N_CELLS,), dtype=jnp.float32),
                          dtype=np.float64) * noise_std)

    params = build_iwama_params(R64, g64, circle, noise64)

    # device "parameters": matrices in bf16 (streamed, f32 accumulation),
    # vectors / alpha in f32
    alpha = jnp.float32(params["alpha"])
    u_bf = jnp.asarray(params["u"], dtype=jnp.bfloat16)
    vh_bf = jnp.asarray(params["vh"], dtype=jnp.bfloat16)
    cinv_bf = jnp.asarray(params["c_inv"], dtype=jnp.bfloat16)
    R_bf = jnp.asarray(params["R"], dtype=jnp.bfloat16)
    s32 = jnp.asarray(params["s"], dtype=jnp.float32)
    g32 = jnp.asarray(params["g"], dtype=jnp.float32)

    fwd = jax.jit(iwama_forward, static_argnames=("tile",))
    # tile=128 exercises the multi-block (parallel x arbitrary) grids at this
    # small test size; the production default is tile=1024 for the 4096-dim case.
    f_out, g_out, omega_sum = fwd(alpha, u_bf, s32, g32, cinv_bf, vh_bf, R_bf,
                                  tile=128)
    jax.block_until_ready((f_out, g_out, omega_sum))

    # -------- correctness check --------------------------------------------
    # float64 NumPy reference with the ORIGINAL op order, evaluated on the same
    # bf16/f32-rounded parameters the kernel consumes (isolates kernel bugs
    # from the documented f64 -> bf16/f32 dtype deviation).
    def as64(x):
        return np.asarray(jax.device_get(x), dtype=np.float64)

    u_m = as64(u_bf.astype(jnp.float32))
    vh_m = as64(vh_bf.astype(jnp.float32))
    cinv_m = as64(cinv_bf.astype(jnp.float32))
    R_m = as64(R_bf.astype(jnp.float32))
    s_m = as64(s32)
    g_m = as64(g32)
    f_ref, g_ref, osum_ref = reference_forward_np(float(alpha), u_m, s_m, g_m,
                                                  cinv_m, vh_m, R_m)

    def rel_err(a, b):
        a = np.asarray(a, dtype=np.float64)
        b = np.asarray(b, dtype=np.float64)
        return float(np.linalg.norm(a - b) / (np.linalg.norm(b) + 1e-12))

    assert np.all(np.isfinite(np.asarray(f_out, dtype=np.float64)))
    assert np.all(np.isfinite(np.asarray(g_out, dtype=np.float64)))
    err_f = rel_err(f_out, f_ref)
    err_g = rel_err(g_out, g_ref)
    err_o = abs(float(omega_sum) - float(osum_ref)) / (abs(float(osum_ref)) + 1e-12)
    # The operator c_inv (pinv of a masked Laplacian) is ill-conditioned, so
    # f32-level rounding of the intermediates is amplified; 5e-2 gives headroom
    # while still cleanly separating "correct" from "buggy" (bugs give O(1)).
    assert err_f < 5e-2, ("f mismatch", err_f)
    assert err_g < 5e-2, ("g mismatch", err_g)
    assert err_o < 1e-3, ("omega_sum mismatch", err_o)

    print("KERNEL_OK")
</pallas_src>

<mosaic_0001>
module attributes {stable_mosaic.version = 11 : i64} {
  func.func @_coef_kernel(%arg0: memref<1xf32, #tpu.memory_space<smem>>, %arg1: memref<1x256xf32, #tpu.memory_space<vmem>>, %arg2: memref<1x256xf32, #tpu.memory_space<vmem>>, %arg3: memref<1x256xf32, #tpu.memory_space<vmem>>, %arg4: memref<1x1xf32, #tpu.memory_space<vmem>>) attributes {dimension_semantics = [], scalar_prefetch = 0 : i64, scratch_operands = 0 : i64, tpu.core_type = #tpu.core_type<tc>} {
    %c0 = arith.constant 0 : index
    %0 = memref.load %arg0[%c0] : memref<1xf32, #tpu.memory_space<smem>>
    %c0_0 = arith.constant 0 : index
    %c0_1 = arith.constant 0 : index
    %1 = vector.load %arg1[%c0_0, %c0_1] : memref<1x256xf32, #tpu.memory_space<vmem>>, vector<1x256xf32>
    %2 = arith.mulf %1, %1 : vector<1x256xf32>
    %3 = vector.broadcast %0 : f32 to vector<1x256xf32>
    %4 = arith.addf %2, %3 : vector<1x256xf32>
    %5 = arith.divf %2, %4 : vector<1x256xf32>
    %c0_2 = arith.constant 0 : index
    %c0_3 = arith.constant 0 : index
    %6 = vector.load %arg2[%c0_2, %c0_3] : memref<1x256xf32, #tpu.memory_space<vmem>>, vector<1x256xf32>
    %7 = arith.mulf %1, %6 : vector<1x256xf32>
    %8 = arith.divf %7, %4 : vector<1x256xf32>
    %c0_4 = arith.constant 0 : index
    %c0_5 = arith.constant 0 : index
    %9 = vector.load %arg3[%c0_4, %c0_5] : memref<1x256xf32, #tpu.memory_space<vmem>>, vector<1x256xf32>
    tpu.vector_store %arg3[%c0_4, %c0_5], %8 {strides = array<i32>} : memref<1x256xf32, #tpu.memory_space<vmem>>, vector<1x256xf32>,
    %cst = arith.constant dense<0.000000e+00> : vector<1xf32>
    %10 = vector.multi_reduction <add>, %5, %cst [1] : vector<1x256xf32> to vector<1xf32>
    %11 = vector.shape_cast %10 : vector<1xf32> to vector<1x1xf32>
    %c0_6 = arith.constant 0 : index
    %c0_7 = arith.constant 0 : index
    %12 = vector.load %arg4[%c0_6, %c0_7] : memref<1x1xf32, #tpu.memory_space<vmem>>, vector<1x1xf32>
    tpu.vector_store %arg4[%c0_6, %c0_7], %11 {strides = array<i32>} : memref<1x1xf32, #tpu.memory_space<vmem>>, vector<1x1xf32>,
    return
  }
}

module attributes {stable_mosaic.version = 11 : i64} {
  func.func @_gemv_kernel(%arg0: i32, %arg1: i32, %arg2: memref<1x128xf32, #tpu.memory_space<vmem>>, %arg3: memref<128x128xbf16, #tpu.memory_space<vmem>>, %arg4: memref<1x128xf32, #tpu.memory_space<vmem>>) attributes {dimension_semantics = [#tpu.dimension_semantics<parallel>, #tpu.dimension_semantics<arbitrary>], iteration_bounds = array<i64: 2, 2>, scalar_prefetch = 0 : i64, scratch_operands = 0 : i64, tpu.core_type = #tpu.core_type<tc>, window_params = [{transform_indices = @transform_0, window_bounds = array<i64: 1, 128>}, {transform_indices = @transform_1, window_bounds = array<i64: 128, 128>}, {transform_indices = @transform_2, window_bounds = array<i64: 1, 128>}]} {
    %c0_i32 = arith.constant 0 : i32
    %0 = arith.cmpi eq, %arg1, %c0_i32 : i32
    %1 = arith.extui %0 : i1 to i32
    %c0_i32_0 = arith.constant 0 : i32
    %2 = arith.cmpi ne, %1, %c0_i32_0 : i32
    scf.if %2 {
      %cst_8 = arith.constant 0.000000e+00 : f32
      %10 = vector.broadcast %cst_8 : f32 to vector<1x128xf32>
      %c0_9 = arith.constant 0 : index
      %c0_10 = arith.constant 0 : index
      %11 = vector.load %arg4[%c0_9, %c0_10] : memref<1x128xf32, #tpu.memory_space<vmem>>, vector<1x128xf32>
      tpu.vector_store %arg4[%c0_9, %c0_10], %10 {strides = array<i32>} : memref<1x128xf32, #tpu.memory_space<vmem>>, vector<1x128xf32>,
    } else {
    }
    %c0 = arith.constant 0 : index
    %c0_1 = arith.constant 0 : index
    %3 = vector.load %arg4[%c0, %c0_1] : memref<1x128xf32, #tpu.memory_space<vmem>>, vector<1x128xf32>
    %c0_2 = arith.constant 0 : index
    %c0_3 = arith.constant 0 : index
    %4 = vector.load %arg2[%c0_2, %c0_3] : memref<1x128xf32, #tpu.memory_space<vmem>>, vector<1x128xf32>
    %c0_4 = arith.constant 0 : index
    %c0_5 = arith.constant 0 : index
    %5 = vector.load %arg3[%c0_4, %c0_5] : memref<128x128xbf16, #tpu.memory_space<vmem>>, vector<128x128xbf16>
    %6 = arith.extf %5 : vector<128x128xbf16> to vector<128x128xf32>
    %cst = arith.constant dense<0.000000e+00> : vector<1x128xf32>
    %7 = tpu.matmul %4, %6, %cst {dimension_numbers = #tpu.dot_dimension_numbers<[1], [0], [0], [1], [0, 0, 1, 1], [], []>} : vector<1x128xf32>, vector<128x128xf32>, vector<1x128xf32> -> vector<1x128xf32>
    %8 = arith.addf %3, %7 : vector<1x128xf32>
    %c0_6 = arith.constant 0 : index
    %c0_7 = arith.constant 0 : index
    %9 = vector.load %arg4[%c0_6, %c0_7] : memref<1x128xf32, #tpu.memory_space<vmem>>, vector<1x128xf32>
    tpu.vector_store %arg4[%c0_6, %c0_7], %8 {strides = array<i32>} : memref<1x128xf32, #tpu.memory_space<vmem>>, vector<1x128xf32>,
    return
  }
  func.func @transform_0(%arg0: i32, %arg1: i32) -> (i32, i32) {
    %c0_i32 = arith.constant 0 : i32
    %c0_i32_0 = arith.constant 0 : i32
    return %c0_i32, %arg1 : i32, i32
  }
  func.func @transform_1(%arg0: i32, %arg1: i32) -> (i32, i32) {
    %c0_i32 = arith.constant 0 : i32
    return %arg1, %arg0 : i32, i32
  }
  func.func @transform_2(%arg0: i32, %arg1: i32) -> (i32, i32) {
    %c0_i32 = arith.constant 0 : i32
    %c0_i32_0 = arith.constant 0 : i32
    return %c0_i32, %arg0 : i32, i32
  }
}

module attributes {stable_mosaic.version = 11 : i64} {
  func.func @_gemv_kernel(%arg0: i32, %arg1: i32, %arg2: memref<1x128xf32, #tpu.memory_space<vmem>>, %arg3: memref<128x128xbf16, #tpu.memory_space<vmem>>, %arg4: memref<1x128xf32, #tpu.memory_space<vmem>>) attributes {dimension_semantics = [#tpu.dimension_semantics<parallel>, #tpu.dimension_semantics<arbitrary>], iteration_bounds = array<i64: 2, 2>, scalar_prefetch = 0 : i64, scratch_operands = 0 : i64, tpu.core_type = #tpu.core_type<tc>, window_params = [{transform_indices = @transform_0, window_bounds = array<i64: 1, 128>}, {transform_indices = @transform_1, window_bounds = array<i64: 128, 128>}, {transform_indices = @transform_2, window_bounds = array<i64: 1, 128>}]} {
    %c0_i32 = arith.constant 0 : i32
    %0 = arith.cmpi eq, %arg1, %c0_i32 : i32
    %1 = arith.extui %0 : i1 to i32
    %c0_i32_0 = arith.constant 0 : i32
    %2 = arith.cmpi ne, %1, %c0_i32_0 : i32
    scf.if %2 {
      %cst_8 = arith.constant 0.000000e+00 : f32
      %10 = vector.broadcast %cst_8 : f32 to vector<1x128xf32>
      %c0_9 = arith.constant 0 : index
      %c0_10 = arith.constant 0 : index
      %11 = vector.load %arg4[%c0_9, %c0_10] : memref<1x128xf32, #tpu.memory_space<vmem>>, vector<1x128xf32>
      tpu.vector_store %arg4[%c0_9, %c0_10], %10 {strides = array<i32>} : memref<1x128xf32, #tpu.memory_space<vmem>>, vector<1x128xf32>,
    } else {
    }
    %c0 = arith.constant 0 : index
    %c0_1 = arith.constant 0 : index
    %3 = vector.load %arg4[%c0, %c0_1] : memref<1x128xf32, #tpu.memory_space<vmem>>, vector<1x128xf32>
    %c0_2 = arith.constant 0 : index
    %c0_3 = arith.constant 0 : index
    %4 = vector.load %arg2[%c0_2, %c0_3] : memref<1x128xf32, #tpu.memory_space<vmem>>, vector<1x128xf32>
    %c0_4 = arith.constant 0 : index
    %c0_5 = arith.constant 0 : index
    %5 = vector.load %arg3[%c0_4, %c0_5] : memref<128x128xbf16, #tpu.memory_space<vmem>>, vector<128x128xbf16>
    %6 = arith.extf %5 : vector<128x128xbf16> to vector<128x128xf32>
    %cst = arith.constant dense<0.000000e+00> : vector<1x128xf32>
    %7 = tpu.matmul %4, %6, %cst {dimension_numbers = #tpu.dot_dimension_numbers<[1], [0], [0], [1], [0, 0, 1, 1], [], []>} : vector<1x128xf32>, vector<128x128xf32>, vector<1x128xf32> -> vector<1x128xf32>
    %8 = arith.addf %3, %7 : vector<1x128xf32>
    %c0_6 = arith.constant 0 : index
    %c0_7 = arith.constant 0 : index
    %9 = vector.load %arg4[%c0_6, %c0_7] : memref<1x128xf32, #tpu.memory_space<vmem>>, vector<1x128xf32>
    tpu.vector_store %arg4[%c0_6, %c0_7], %8 {strides = array<i32>} : memref<1x128xf32, #tpu.memory_space<vmem>>, vector<1x128xf32>,
    return
  }
  func.func @transform_0(%arg0: i32, %arg1: i32) -> (i32, i32) {
    %c0_i32 = arith.constant 0 : i32
    %c0_i32_0 = arith.constant 0 : i32
    return %c0_i32, %arg1 : i32, i32
  }
  func.func @transform_1(%arg0: i32, %arg1: i32) -> (i32, i32) {
    %c0_i32 = arith.constant 0 : i32
    return %arg1, %arg0 : i32, i32
  }
  func.func @transform_2(%arg0: i32, %arg1: i32) -> (i32, i32) {
    %c0_i32 = arith.constant 0 : i32
    %c0_i32_0 = arith.constant 0 : i32
    return %c0_i32, %arg0 : i32, i32
  }
}

module attributes {stable_mosaic.version = 11 : i64} {
  func.func @_gemv_t_kernel(%arg0: i32, %arg1: i32, %arg2: memref<1x128xf32, #tpu.memory_space<vmem>>, %arg3: memref<128x128xbf16, #tpu.memory_space<vmem>>, %arg4: memref<1x128xf32, #tpu.memory_space<vmem>>) attributes {dimension_semantics = [#tpu.dimension_semantics<parallel>, #tpu.dimension_semantics<arbitrary>], iteration_bounds = array<i64: 2, 2>, scalar_prefetch = 0 : i64, scratch_operands = 0 : i64, tpu.core_type = #tpu.core_type<tc>, window_params = [{transform_indices = @transform_0, window_bounds = array<i64: 1, 128>}, {transform_indices = @transform_1, window_bounds = array<i64: 128, 128>}, {transform_indices = @transform_2, window_bounds = array<i64: 1, 128>}]} {
    %c0_i32 = arith.constant 0 : i32
    %0 = arith.cmpi eq, %arg1, %c0_i32 : i32
    %1 = arith.extui %0 : i1 to i32
    %c0_i32_0 = arith.constant 0 : i32
    %2 = arith.cmpi ne, %1, %c0_i32_0 : i32
    scf.if %2 {
      %cst_8 = arith.constant 0.000000e+00 : f32
      %10 = vector.broadcast %cst_8 : f32 to vector<1x128xf32>
      %c0_9 = arith.constant 0 : index
      %c0_10 = arith.constant 0 : index
      %11 = vector.load %arg4[%c0_9, %c0_10] : memref<1x128xf32, #tpu.memory_space<vmem>>, vector<1x128xf32>
      tpu.vector_store %arg4[%c0_9, %c0_10], %10 {strides = array<i32>} : memref<1x128xf32, #tpu.memory_space<vmem>>, vector<1x128xf32>,
    } else {
    }
    %c0 = arith.constant 0 : index
    %c0_1 = arith.constant 0 : index
    %3 = vector.load %arg4[%c0, %c0_1] : memref<1x128xf32, #tpu.memory_space<vmem>>, vector<1x128xf32>
    %c0_2 = arith.constant 0 : index
    %c0_3 = arith.constant 0 : index
    %4 = vector.load %arg2[%c0_2, %c0_3] : memref<1x128xf32, #tpu.memory_space<vmem>>, vector<1x128xf32>
    %c0_4 = arith.constant 0 : index
    %c0_5 = arith.constant 0 : index
    %5 = vector.load %arg3[%c0_4, %c0_5] : memref<128x128xbf16, #tpu.memory_space<vmem>>, vector<128x128xbf16>
    %6 = arith.extf %5 : vector<128x128xbf16> to vector<128x128xf32>
    %cst = arith.constant dense<0.000000e+00> : vector<1x128xf32>
    %7 = tpu.matmul %4, %6, %cst {dimension_numbers = #tpu.dot_dimension_numbers<[1], [1], [0], [0], [0, 0, 1, 0], [], []>} : vector<1x128xf32>, vector<128x128xf32>, vector<1x128xf32> -> vector<1x128xf32>
    %8 = arith.addf %3, %7 : vector<1x128xf32>
    %c0_6 = arith.constant 0 : index
    %c0_7 = arith.constant 0 : index
    %9 = vector.load %arg4[%c0_6, %c0_7] : memref<1x128xf32, #tpu.memory_space<vmem>>, vector<1x128xf32>
    tpu.vector_store %arg4[%c0_6, %c0_7], %8 {strides = array<i32>} : memref<1x128xf32, #tpu.memory_space<vmem>>, vector<1x128xf32>,
    return
  }
  func.func @transform_0(%arg0: i32, %arg1: i32) -> (i32, i32) {
    %c0_i32 = arith.constant 0 : i32
    %c0_i32_0 = arith.constant 0 : i32
    return %c0_i32, %arg1 : i32, i32
  }
  func.func @transform_1(%arg0: i32, %arg1: i32) -> (i32, i32) {
    %c0_i32 = arith.constant 0 : i32
    return %arg0, %arg1 : i32, i32
  }
  func.func @transform_2(%arg0: i32, %arg1: i32) -> (i32, i32) {
    %c0_i32 = arith.constant 0 : i32
    %c0_i32_0 = arith.constant 0 : i32
    return %c0_i32, %arg0 : i32, i32
  }
}

module attributes {stable_mosaic.version = 11 : i64} {
  func.func @_gemv_t_kernel(%arg0: i32, %arg1: i32, %arg2: memref<1x128xf32, #tpu.memory_space<vmem>>, %arg3: memref<128x128xbf16, #tpu.memory_space<vmem>>, %arg4: memref<1x128xf32, #tpu.memory_space<vmem>>) attributes {dimension_semantics = [#tpu.dimension_semantics<parallel>, #tpu.dimension_semantics<arbitrary>], iteration_bounds = array<i64: 2, 2>, scalar_prefetch = 0 : i64, scratch_operands = 0 : i64, tpu.core_type = #tpu.core_type<tc>, window_params = [{transform_indices = @transform_0, window_bounds = array<i64: 1, 128>}, {transform_indices = @transform_1, window_bounds = array<i64: 128, 128>}, {transform_indices = @transform_2, window_bounds = array<i64: 1, 128>}]} {
    %c0_i32 = arith.constant 0 : i32
    %0 = arith.cmpi eq, %arg1, %c0_i32 : i32
    %1 = arith.extui %0 : i1 to i32
    %c0_i32_0 = arith.constant 0 : i32
    %2 = arith.cmpi ne, %1, %c0_i32_0 : i32
    scf.if %2 {
      %cst_8 = arith.constant 0.000000e+00 : f32
      %10 = vector.broadcast %cst_8 : f32 to vector<1x128xf32>
      %c0_9 = arith.constant 0 : index
      %c0_10 = arith.constant 0 : index
      %11 = vector.load %arg4[%c0_9, %c0_10] : memref<1x128xf32, #tpu.memory_space<vmem>>, vector<1x128xf32>
      tpu.vector_store %arg4[%c0_9, %c0_10], %10 {strides = array<i32>} : memref<1x128xf32, #tpu.memory_space<vmem>>, vector<1x128xf32>,
    } else {
    }
    %c0 = arith.constant 0 : index
    %c0_1 = arith.constant 0 : index
    %3 = vector.load %arg4[%c0, %c0_1] : memref<1x128xf32, #tpu.memory_space<vmem>>, vector<1x128xf32>
    %c0_2 = arith.constant 0 : index
    %c0_3 = arith.constant 0 : index
    %4 = vector.load %arg2[%c0_2, %c0_3] : memref<1x128xf32, #tpu.memory_space<vmem>>, vector<1x128xf32>
    %c0_4 = arith.constant 0 : index
    %c0_5 = arith.constant 0 : index
    %5 = vector.load %arg3[%c0_4, %c0_5] : memref<128x128xbf16, #tpu.memory_space<vmem>>, vector<128x128xbf16>
    %6 = arith.extf %5 : vector<128x128xbf16> to vector<128x128xf32>
    %cst = arith.constant dense<0.000000e+00> : vector<1x128xf32>
    %7 = tpu.matmul %4, %6, %cst {dimension_numbers = #tpu.dot_dimension_numbers<[1], [1], [0], [0], [0, 0, 1, 0], [], []>} : vector<1x128xf32>, vector<128x128xf32>, vector<1x128xf32> -> vector<1x128xf32>
    %8 = arith.addf %3, %7 : vector<1x128xf32>
    %c0_6 = arith.constant 0 : index
    %c0_7 = arith.constant 0 : index
    %9 = vector.load %arg4[%c0_6, %c0_7] : memref<1x128xf32, #tpu.memory_space<vmem>>, vector<1x128xf32>
    tpu.vector_store %arg4[%c0_6, %c0_7], %8 {strides = array<i32>} : memref<1x128xf32, #tpu.memory_space<vmem>>, vector<1x128xf32>,
    return
  }
  func.func @transform_0(%arg0: i32, %arg1: i32) -> (i32, i32) {
    %c0_i32 = arith.constant 0 : i32
    %c0_i32_0 = arith.constant 0 : i32
    return %c0_i32, %arg1 : i32, i32
  }
  func.func @transform_1(%arg0: i32, %arg1: i32) -> (i32, i32) {
    %c0_i32 = arith.constant 0 : i32
    return %arg0, %arg1 : i32, i32
  }
  func.func @transform_2(%arg0: i32, %arg1: i32) -> (i32, i32) {
    %c0_i32 = arith.constant 0 : i32
    %c0_i32_0 = arith.constant 0 : i32
    return %c0_i32, %arg0 : i32, i32
  }
}

</mosaic_0001>

<bundles_post_ra>
// kernel: iwama_forward.6
= control target key start
LH: loop header
LB: loop body
LE: loop exit
PB: predicated region body
PF: predicated region fallthrough
CT: control target
= control target key end

     0   :  { %s147_s0 = inlined_call_operand.<no memory space> [shape: f32[1], index: 0, kind: input, shape index: {}]   ;;  %s148_s1 = inlined_call_operand.vmem [shape: f32[1,256], index: 1, kind: input, shape index: {}]   ;;  %s149_s2 = inlined_call_operand.vmem [shape: f32[1,256], index: 2, kind: input, shape index: {}]   ;;  %s150_s3 = inlined_call_operand.vmem [shape: f32[1,256], index: 3, kind: output, shape index: {0}]   ;;  %s151_s4 = inlined_call_operand.hbm [shape: f32[1,1], index: 4, kind: output, shape index: {1}]  }
   0x1   :  { %v19_v0 = vld [vmem:[%s148_s1] sm:$0x3]  ;;  %v21_v1 = vstv %s147_s0 }
   0x2   :  { %v20_v2 = vmul.f32 %v19_v0, %v19_v0 }
   0x3   :  { %11 = vsyncpa [#allocation4], 0  ;;  %v28_v4 = vlaneseq  ;;  %v25_v5 = vld [vmem:[%s149_s2] sm:$0x3]  ;;  %vm44_vm1 = vcmask 1040384   ;;  %s97_s2 = smov [#allocation3]  }
   0x4   :  { %v22_v3 = vadd.f32 %v21_v1, %v20_v2  ;;  %v26_v7 = vmul.f32 %v25_v5, %v19_v0  ;;  %s60_s21 = sshll.u32 %s97_s2, 4  ;;  %vm50_vm2 = vcmask 0   ;;  %s61_s21 = int_to_ptr.vmem [resolvable:$true] %s60_s21 }
   0x5   :  { %v35_v6 = vshrl.u32 %v28_v4, 7  ;;  %vm30_vm0 = vcmp.lt.s32.totalorder %v28_v4, 256  ;;  %s73_s22 = scalar_lea.vmem %s61_s21, 16  ;;  %s77_s23 = scalar_lea.vmem %s61_s21, 32 }
   0x6   :  { %71 = vrcp.f32 %v22_v3  ;;  %p74_p0 = scmp.ne.s32.totalorder %s61_s21, %s73_s22  ;;  %p78_p1 = scmp.lt.s32.totalorder %s61_s21, %s61_s21 }
   0x7   :  { %v36_v8 = vsub.s32 0, %v35_v6  ;;  %v40_v9 = vsub.s32 1, %v35_v6  ;;  %p79_p2 = scmp.lt.s32.totalorder %s77_s23, %s73_s22 }
   0x9   :  { %p80_p3 = por %p79_p2, %p78_p1 }
   0xb   :  { %p81_p4 = pnand %p80_p3, %p74_p0 }
  0x10   :  { %v72_v10 = vpop.eup %71 }
  0x11   :  { %v24_v11 = vmul.f32 %v72_v10, %v20_v2  ;;  %v27_v12 = vmul.f32 %v72_v10, %v26_v7 }
  0x13   :  { %32 = vst.msk [vmem:[%s150_s3] sm:$0x3] %vm30_vm0, %v27_v12  ;;  %v37_v13 = vrot.slane %v24_v11, %v36_v8  ;;  %v41_v14 = vrot.slane %v24_v11, %v40_v9 }
  0x15   :  { %v45_v15 = vsel %vm44_vm1, %v37_v13, 0.0  ;;  %v46_v16 = vsel %vm44_vm1, %v41_v14, 0.0 }
  0x16   :  { %v47_v17 = vadd.f32 %v46_v16, %v45_v15 }
  0x18   :  { %48 = vadd.xlane.f32.xlu0 %v47_v17 }
  0xa5   :  { %v49_v18 = vpop.xlane.xlu0 %48 }
  0xa6   :  { %51 = vst.msk [vmem:[#allocation3] sm:$0x1] %vm50_vm2, %v49_v18 }
  0xa7   :  { %84 = shalt.err (!%p81_p4)
}
  0xa8   :  { %s85_s25 = scalar_lea.hbm %s151_s4, 16 }
  0xa9   :  { %p86_p5 = scmp.ne.s32.totalorder %s151_s4, %s85_s25  ;;  %p89_p6 = scmp.lt.u32.totalorder %s85_s25, %s151_s4 }
  0xab   :  { %p91_p7 = pnand %p89_p6, %p86_p5 }
  0xad   :  { %94 = shalt.err (!%p91_p7)
}
  0xae   :  { %63 = dma.vmem_to_hbm [thread:$0]  %s61_s21, 16, %s151_s4, [#allocation4]  }
  0xaf   :  { %95 = dma.done.wait [#allocation4], 16  }
  0xb0   :  { %96 = vsyncadd [#allocation4], 4294967280 }
  0xb1   :  { %69 = vsyncpa [#allocation4], 1 }

// kernel: iwama_forward.5
= control target key start
LH: loop header
LB: loop body
LE: loop exit
PB: predicated region body
PF: predicated region fallthrough
CT: control target
= control target key end

     0   :  { %s1090_s0 = inlined_call_operand.hbm [shape: f32[1,256], index: 0, kind: input, shape index: {}]   ;;  %s1091_s1 = inlined_call_operand.hbm [shape: bf16[256,256], index: 1, kind: input, shape index: {}]   ;;  %s1092_s2 = inlined_call_operand.vmem [shape: f32[1,256], index: 2, kind: output, shape index: {}]  }
   0x1   :  { %1095 = sst [smem:[#allocation8_spill]] %s1090_s0 }
   0x2   :  { %7 = vsyncpa [#allocation3], 0 }
   0x3   :  { %9 = vsyncpa [#allocation3 + $0x1], 0 }
   0x4   :  { %10 = vsyncpa [#allocation5], 0 }
   0x5   :  { %12 = vsyncpa [#allocation5 + $0x1], 0  ;;  %s831_s9 = smov 0   ;;  %s833_s10 = smov 0  }
   0x6   :  { %s835_s11 = smov 0   ;;  %s837_s12 = smov 0  }
   0x7   :  { %s839_s13 = smov 0   ;;  %s841_s14 = smov 0  }
   0x8   :  { %s843_s15 = smov 0   ;;  %s845_s16 = smov 0  }
   0x9   :  { %s847_s17 = smov 0   ;;  %s849_s18 = smov 0  }
   0xa   :  { %s851_s19 = smov 0  }
   0xb LB: > { %s414_s20 = sadd.s32 4294967295, %s805_s19   ;;  %s27_s21 = sadd.s32 1, %s797_s17  ;;  %s805_s19 = sphi %s851_s19, %s18_s19   ;;  %s801_s18 = sphi %s849_s18, %s1115_s18   ;;  %s797_s17 = sphi %s847_s17, %s1114_s17   ;;  %s793_s16 = sphi %s845_s16, %s1113_s16   ;;  %s789_s15 = sphi %s843_s15, %s1112_s15   ;;  %s785_s14 = sphi %s841_s14, %s1111_s14   ;;  %s781_s13 = sphi %s839_s13, %s1110_s13   ;;  %s777_s12 = sphi %s837_s12, %s1109_s12   ;;  %s773_s11 = sphi %s835_s11, %s1108_s11   ;;  %s769_s10 = sphi %s833_s10, %s1107_s10   ;;  %s765_s9 = sphi %s831_s9, %s1106_s9  }
   0xc   : > { %p28_p0 = scmp.ge.s32.totalorder %s27_s21, 2  ;;  %s30_s22 = sadd.s32 1, %s801_s18 }
   0xd   : > { %s37_s23 = sadd.s32 1, %s785_s14  ;;  %p44_p1 = scmp.ne.s32.totalorder %s785_s14, %s781_s13 }
   0xe   : > { %s1117_s21 = smov (%p28_p0, %s27_s21), 0  ;;  %s1119_s22 = smov (!%p28_p0, %s30_s22), %s801_s18 }
   0xf   : > { %s34_s24 = ssub.s32 %s797_s17, %s1117_s21  ;;  %p45_p2 = scmp.eq.s32.totalorder %s805_s19, 0 }
  0x10   : > { %p32_p3 = scmp.ge.s32.totalorder %s1119_s22, 2  ;;  %p35_p4 = scmp.eq.s32.totalorder %s34_s24, 0 }
  0x11   : > { %p898_p5 = por %p45_p2, %p44_p1  ;;  %p50_p6 = scmp.ne.s32.totalorder %s781_s13, %s777_s12 }
  0x12   : > { %s1121_s22 = smov (%p32_p3, %s1119_s22), 0  ;;  %p51_p7 = scmp.eq.s32.totalorder %s414_s20, 0 }
  0x13   : > { %s906_s26 = scalar_select %p35_p4, %s785_s14, %s37_s23  }
  0x14   : > { %s61_s27 = ssub.s32 %s801_s18, %s1121_s22  ;;  %s65_s29 = sadd.s32 1, %s773_s11 }
  0x15   : > { %s62_s28 = sor.u32 %s61_s27, %s34_s24  ;;  %p911_p8 = por %p51_p7, %p50_p6 }
  0x16   : > { %p63_p9 = scmp.eq.s32.totalorder %s62_s28, 0  ;;  %p72_p10 = scmp.ne.s32.totalorder %s773_s11, %s769_s10 }
  0x17   : > { %s1097_s30 = scalar_select %p911_p8, 1, 0 }
  0x18   : > { %p78_p11 = scmp.ne.s32.totalorder %s769_s10, %s765_s9  ;;  %p74_p12 = por %p72_p10, %p45_p2 }
  0x19   : > { %s920_s3 = scalar_select %p63_p9, %s773_s11, %s65_s29  }
  0x1a   : > { %p924_p13 = por %p78_p11, %p51_p7  ;;  %p555_p0 = scmp.lt.s32.totalorder %s805_s19, 4 }
  0x1b   : > { %s128_s5 = sand.u32 1, %s785_s14   ;;  %s418_s6 = sshll.u32 %s797_s17, 4 }
  0x1c   : > { %s1098_s4 = scalar_select %p924_p13, 1, 0 }
  0x1d   : > { %s1099_s0 = sld [smem:[#allocation8_spill]]  ;;  %s131_s9 = scalar_lea.vmem [#allocation2], %s128_s5 }
  0x1e   : > { %s138_s20 = sshll.u32 %s131_s9, 4  ;;  %p940_p1 = pnand %p555_p0, %p898_p5  ;;  %s936_s20 = int_to_ptr.vmem [resolvable:$true] %s138_s20 }
  0x1f   : > { %s428_s24 = sshll.u32 %s797_s17, 5  ;;  %p945_p2 = pnand %p555_p0, %p74_p12 }
  0x20   : > { %s129_s28 = scalar_lea.sflag [#allocation3], %s128_s5  ;;  %p653_p6 = pneg %p940_p1 }
  0x23   : > { %s934_s12 = scalar_lea.hbm %s1099_s0, %s418_s6  ;;  %s656_s7 = scalar_lea.hbm %s1099_s0, 32 }
  0x24   : > { %s651_s29 = scalar_lea.hbm %s934_s12, 16  ;;  %p657_p9 = scmp.lt.u32.totalorder %s934_s12, %s1099_s0 }
  0x25   : > { %p652_p4 = scmp.ne.s32.totalorder %s934_s12, %s651_s29  ;;  %p658_p10 = scmp.lt.u32.totalorder %s656_s7, %s651_s29 }
  0x26   : > { %p660_p12 = scmp.lt.u32.totalorder %s651_s29, %s934_s12 }
  0x27   : > { %p654_p7 = pnand %p653_p6, %p652_p4  ;;  %p659_p11 = por %p658_p10, %p657_p9 }
  0x29   : > { %p655_p5 = pneg %p654_p7  ;;  %p661_p0 = por %p660_p12, %p659_p11 }
  0x2b   : > { %p662_p3 = pnand %p661_p0, %p655_p5 }
  0x2d   : > { %665 = shalt.err (!%p662_p3)
}
  0x2e   : > { %s666_s5 = scalar_lea.vmem %s936_s20, 16  ;;  %s807_s25 = smov [#allocation2]  }
  0x2f   : > { %p667_p4 = scmp.ne.s32.totalorder %s936_s20, %s666_s5  ;;  %s671_s6 = sshll.u32 %s807_s25, 4  ;;  %s672_s6 = int_to_ptr.vmem [resolvable:$false] %s671_s6 }
  0x30   : > { %s673_s8 = scalar_lea.vmem %s672_s6, 32  ;;  %p674_p8 = scmp.lt.s32.totalorder %s936_s20, %s672_s6 }
  0x31   : > { %p669_p7 = pnand %p667_p4, %p653_p6  ;;  %p675_p9 = scmp.lt.s32.totalorder %s673_s8, %s666_s5 }
  0x33   : > { %p670_p13 = pneg %p669_p7  ;;  %p676_p10 = por %p675_p9, %p674_p8 }
  0x35   : > { %p677_p11 = pnand %p676_p10, %p670_p13 }
  0x37   : > { %680 = shalt.err (!%p677_p11)
}
  0x38   : > { %551 = dma.hbm_to_vmem [thread:$0]  (!%p940_p1), %s934_s12, 16, %s936_s20, %s129_s28  }
  0x39   : > { %p166_p3 = scmp.lt.s32.totalorder %s805_s19, 5  ;;  %s145_s29 = sand.u32 1, %s773_s11  }
  0x3a   : > { %s155_s7 = sadd.s32 %s801_s18, %s428_s24  ;;  %p1102_p6 = scmp.ge.s32.totalorder %s805_s19, 1 }
  0x3b   : > { %s419_s23 = sshll.u32 %s145_s29, 6  ;;  %s422_s5 = sshll.u32 %s155_s7, 6 }
  0x3c   : > { %p982_p8 = pnand %p1102_p6, %p166_p3  ;;  %s989_s8 = scalar_lea.hbm %s1091_s1, %s422_s5 }
  0x3d   : > { %s149_s12 = scalar_lea.vmem [#allocation4], %s419_s23  ;;  %s993_s24 = scalar_lea.sflag [#allocation5], %s145_s29 }
  0x3e   : > { %s158_s20 = sshll.u32 %s149_s12, 4  ;;  %s681_s28 = scalar_lea.hbm %s989_s8, 1024  ;;  %s991_s20 = int_to_ptr.vmem [resolvable:$true] %s158_s20 }
  0x3f   : > { %p682_p13 = scmp.ne.s32.totalorder %s989_s8, %s681_s28  ;;  %p683_p1 = pneg %p945_p2 }
  0x40   : > { %s686_s25 = scalar_lea.hbm %s1091_s1, 4096  ;;  %p687_p0 = scmp.lt.u32.totalorder %s989_s8, %s1091_s1 }
  0x41   : > { %p684_p5 = pnand %p683_p1, %p682_p13  ;;  %p688_p4 = scmp.lt.u32.totalorder %s686_s25, %s681_s28 }
  0x42   : > { %p690_p9 = scmp.lt.u32.totalorder %s681_s28, %s989_s8 }
  0x43   : > { %p685_p12 = pneg %p684_p5  ;;  %p689_p7 = por %p688_p4, %p687_p0 }
  0x45   : > { %p691_p10 = por %p690_p9, %p689_p7 }
  0x47   : > { %p692_p11 = pnand %p691_p10, %p685_p12 }
  0x49   : > { %695 = shalt.err (!%p692_p11)
}
  0x4a   : > { %s696_s29 = scalar_lea.vmem %s991_s20, 1024  ;;  %s808_s23 = smov [#allocation4]  }
  0x4b   : > { %p697_p3 = scmp.ne.s32.totalorder %s991_s20, %s696_s29  ;;  %s701_s12 = sshll.u32 %s808_s23, 4  ;;  %s702_s12 = int_to_ptr.vmem [resolvable:$false] %s701_s12 }
  0x4c   : > { %s703_s0 = scalar_lea.vmem %s702_s12, 2048  ;;  %p704_p5 = scmp.lt.s32.totalorder %s991_s20, %s702_s12 }
  0x4d   : > { %p699_p6 = pnand %p697_p3, %p683_p1  ;;  %p705_p0 = scmp.lt.s32.totalorder %s703_s0, %s696_s29 }
  0x4f   : > { %p700_p13 = pneg %p699_p6  ;;  %p706_p4 = por %p705_p0, %p704_p5 }
  0x51   : > { %p707_p7 = pnand %p706_p4, %p700_p13 }
  0x53   : > { %710 = shalt.err (!%p707_p7)
}
  0x54   : > { %s809_s28 = smov 128   ;;  %s810_s7 = smov 64  }
  0x55   : > { %s811_s5 = smov 4   ;;  %170 = sbr.rel (%p982_p8) target bundleno = 354 (0x162), region = 28 }
  0x56   : > { %554 = dma.hbm_to_vmem [thread:$0]  (!%p945_p2), %s989_s8, 1024, %s991_s20, %s993_s24, %s809_s28, %s810_s7, %s811_s5  }
  0x57   : > { %s172_s25 = sand.u32 (!%p982_p8), 1, %s781_s13   ;;  %p1104_p1 = scmp.ne.s32.totalorder (!%p982_p8), %s1097_s30, 0 }
  0x58   : > { %s173_s6 = scalar_lea.sflag (!%p982_p8), [#allocation3], %s172_s25  ;;  %s1024_s29 = scalar_lea.vmem (!%p982_p8), [#allocation2], %s172_s25 }
  0x5c   : > { %756 = dma.done.wait (%p1104_p1), %s173_s6, 16  }
  0x5d   : > { %758 = vsyncadd (%p1104_p1), %s173_s6, 4294967280  ;;  %s180_s23 = sand.u32 1, %s769_s10   ;;  %p1105_p2 = scmp.ne.s32.totalorder %s1098_s4, 0 }
  0x5e   : > { %s424_s12 = sshll.u32 %s180_s23, 6  ;;  %s181_s27 = scalar_lea.sflag [#allocation5], %s180_s23 }
  0x5f   : > { %s1031_s8 = scalar_lea.vmem [#allocation4], %s424_s12 }
  0x60   : > { %760 = dma.done.wait (%p1105_p2), %s181_s27, 1024  }
  0x61   : > { %762 = vsyncadd (%p1105_p2), %s181_s27, 4294966272  ;;  %p208_p8 = scmp.lt.s32.totalorder %s793_s16, 1  ;;  %p425_p12 = scmp.ne.s32.totalorder %s789_s15, 0 }
  0x62   : > { %v812_v0 = vmov (!%p425_p12), 0.0  }
  0x63   : > { %s1123_s16 = smov (!%p208_p8, %s793_s16), 1  ;;  %214 = sbr.rel (%p425_p12) target bundleno = 106 (0x6a), region = 40 }
  0x64   : > { %s1042_s30 = scalar_lea.vmem %s1092_s2, %s1123_s16 }
  0x65   : > { %215 = vst [vmem:[%s1042_s30] sm:$0x1] (!%p425_p12), %v812_v0 }
  0x6a PF: > { %v430_v1 = vld [vmem:[%s1031_s8] sm:$0xff]   ;;  %v813_v2 = vmov 0.0|0.0   ;;  %vm814_vm0 = vmmov 0   ;;  %v815_v3 = vmov 0.0   ;;  %v461_v4 = vld [vmem:[%s1031_s8 + $0x8] sm:$0xff]   ;;  %v462_v5 = vld [vmem:[%s1031_s8 + $0x10] sm:$0xff]  }
  0x6b   : > { %520 = vmatprep.subr.bf16.mxu0 %v813_v2  ;;  %517 = vmatprep.mubr.msk.f32.mxu0 %vm814_vm0, %v815_v3  ;;  %v463_v6 = vld [vmem:[%s1031_s8 + $0x18] sm:$0xff]   ;;  %v464_v7 = vld [vmem:[%s1031_s8 + $0x20] sm:$0xff]   ;;  %v465_v8 = vld [vmem:[%s1031_s8 + $0x28] sm:$0xff]  }
  0x6c   : > { %522 = vmatpush3.bf16.msra.mxu0 %v430_v1  ;;  %v466_v9 = vld [vmem:[%s1031_s8 + $0x30] sm:$0xff]   ;;  %v467_v10 = vld [vmem:[%s1031_s8 + $0x38] sm:$0xff]  }
  0x6d   : > { %523 = vmatprep.subr.bf16.mxu0 %v813_v2  ;;  %v217_v11 = vld [vmem:[%s1024_s29] sm:$0x1] }
  0x6e   : > { %v216_v12 = vld [vmem:[%s1042_s30] sm:$0x1] }
  0x70   : > { %525 = vmatpush3.bf16.msra.mxu0 %v461_v4 }
  0x71   : > { %526 = vmatprep.subr.bf16.mxu0 %v813_v2 }
  0x74   : > { %528 = vmatpush3.bf16.msra.mxu0 %v462_v5 }
  0x75   : > { %529 = vmatprep.subr.bf16.mxu0 %v813_v2 }
  0x78   : > { %531 = vmatpush3.bf16.msra.mxu0 %v463_v6 }
  0x79   : > { %532 = vmatprep.subr.bf16.mxu0 %v813_v2 }
  0x7c   : > { %534 = vmatpush3.bf16.msra.mxu0 %v464_v7 }
  0x7d   : > { %535 = vmatprep.subr.bf16.mxu0 %v813_v2 }
  0x80   : > { %537 = vmatpush3.bf16.msra.mxu0 %v465_v8 }
  0x81   : > { %538 = vmatprep.subr.bf16.mxu0 %v813_v2 }
  0x84   : > { %540 = vmatpush3.bf16.msra.mxu0 %v466_v9 }
  0x85   : > { %541 = vmatprep.subr.bf16.mxu0 %v813_v2 }
  0x88   : > { %543 = vmatpush3.bf16.msra.mxu0 %v467_v10 }
  0x8b   : > { %518 = vmatmul.mubr.f32.vlgmr.msra.gmra.mrb[0].mxu0 %v217_v11 }
 0x15e   : > { %v316_v13 = vpop.f32.mrb[0].mxu0 }
 0x15f   : > { %v320_v14 = vadd.f32 %v316_v13, %v216_v12  ;;  %v519_v15 = vpop.f32.mrb[1].mxu0 }
 0x161   : > { %321 = vst [vmem:[%s1042_s30] sm:$0x1] %v320_v14 }
 0x162 PF: > { %s18_s19 = sadd.s32 1, %s805_s19   ;;  %s1106_s9 = smov %s769_s10 }
 0x163   : > { %p15_p9 = scmp.ge.s32.totalorder %s18_s19, 6   ;;  %s1107_s10 = smov %s773_s11 }
 0x164   : > { %s1108_s11 = smov %s920_s3  ;;  %s1109_s12 = smov %s781_s13 }
 0x165   : > { %s1110_s13 = smov %s785_s14  ;;  %s1111_s14 = smov %s906_s26 }
 0x166   : > { %s1112_s15 = smov %s797_s17  ;;  %s1113_s16 = smov %s801_s18 }
 0x167   : > { %s1114_s17 = smov %s1117_s21  ;;  %s1115_s18 = smov %s1121_s22 }
 0x168   :  { %17 = sbr.rel (!%p15_p9) target bundleno = 11 (0xb), region = 85 }
 0x16f   :  { %339 = vsyncpa [#allocation3], 1 }
 0x170   :  { %341 = vsyncpa [#allocation3 + $0x1], 1 }
 0x171   :  { %342 = vsyncpa [#allocation5], 1 }
 0x172   :  { %344 = vsyncpa [#allocation5 + $0x1], 1 }

// kernel: iwama_forward.7
= control target key start
LH: loop header
LB: loop body
LE: loop exit
PB: predicated region body
PF: predicated region fallthrough
CT: control target
= control target key end

     0   :  { %s723_s9 = smov 0   ;;  %s725_s10 = smov 0   ;;  %s859_s0 = inlined_call_operand.vmem [shape: f32[1,256], index: 0, kind: input, shape index: {}]   ;;  %s860_s1 = inlined_call_operand.vmem [shape: bf16[256,256], index: 1, kind: input, shape index: {}]   ;;  %s861_s2 = inlined_call_operand.vmem [shape: f32[1,256], index: 2, kind: output, shape index: {}]  }
   0x1   :  { %s727_s11 = smov 0   ;;  %s729_s12 = smov 0  }
   0x2   :  { %s731_s13 = smov 0   ;;  %s733_s14 = smov 0  }
   0x3   :  { %s735_s15 = smov 0  }
   0x4 LB: > { %s21_s16 = sadd.s32 1, %s694_s13  ;;  %s24_s17 = sadd.s32 1, %s698_s14  ;;  %s702_s15 = sphi %s735_s15, %s12_s15   ;;  %s698_s14 = sphi %s733_s14, %s867_s14   ;;  %s694_s13 = sphi %s731_s13, %s866_s13   ;;  %s690_s12 = sphi %s729_s12, %s865_s12   ;;  %s686_s11 = sphi %s727_s11, %s864_s11   ;;  %s682_s10 = sphi %s725_s10, %s863_s10   ;;  %s678_s9 = sphi %s723_s9, %s862_s9  }
   0x5   : > { %p22_p0 = scmp.ge.s32.totalorder %s21_s16, 2  ;;  %p66_p1 = scmp.ne.s32.totalorder %s682_s10, %s678_s9 }
   0x6   : > { %p67_p2 = scmp.eq.s32.totalorder %s702_s15, 0  ;;  %s59_s21 = sadd.s32 1, %s682_s10 }
   0x7   : > { %s869_s16 = smov (%p22_p0, %s21_s16), 0  ;;  %s871_s17 = smov (!%p22_p0, %s24_s17), %s698_s14 }
   0x8   : > { %p68_p3 = por %p67_p2, %p66_p1  ;;  %p26_p4 = scmp.ge.s32.totalorder %s871_s17, 2 }
   0x9   : > { %s54_s18 = ssub.s32 %s694_s13, %s869_s16  ;;  %p462_p6 = scmp.ge.s32.totalorder %s702_s15, 4 }
   0xa   : > { %s873_s17 = smov (%p26_p4, %s871_s17), 0 }
   0xb   : > { %s55_s19 = ssub.s32 %s698_s14, %s873_s17  ;;  %118 = sbr.rel (%p462_p6) target bundleno = 34 (0x22), region = 16 }
   0xc   : > { %s56_s20 = sor.u32 %s55_s19, %s54_s18 }
   0xd   : > { %p57_p5 = scmp.eq.s32.totalorder %s56_s20, 0 }
   0xf   : > { %s774_s22 = scalar_select %p57_p5, %s682_s10, %s59_s21  }
  0x12   : > { %127 = sbr.rel (!%p68_p3) target bundleno = 34 (0x22), region = 24  ;;  %s129_s23 = sand.u32 (%p68_p3), 1, %s682_s10  }
  0x13   : > { %s472_s24 = sshll.u32 (%p68_p3), %s694_s13, 5  ;;  %s463_s25 = sshll.u32 (%p68_p3), %s129_s23, 6 }
  0x14   : > { %s134_s26 = sadd.s32 (%p68_p3), %s698_s14, %s472_s24  ;;  %s131_s3 = scalar_lea.vmem (%p68_p3), [#allocation2], %s463_s25 }
  0x15   : > { %s466_s27 = sshll.u32 (%p68_p3), %s134_s26, 2 }
  0x16   : > { %s783_s30 = scalar_lea.vmem (%p68_p3), %s860_s1, %s466_s27 }
  0x17   : > { %v152_v0 = vld [vmem:[%s783_s30] sm:$0xf] (%p68_p3)  ;;  %v154_v1 = vld [vmem:[%s783_s30 + $0x8] sm:$0xf] (%p68_p3)  ;;  %v156_v2 = vld [vmem:[%s783_s30 + $0x10] sm:$0xf] (%p68_p3) }
  0x18   : > { %153 = vst [vmem:[%s131_s3] sm:$0xf] (%p68_p3), %v152_v0  ;;  %155 = vst [vmem:[%s131_s3 + $0x4] sm:$0xf] (%p68_p3), %v154_v1  ;;  %v158_v3 = vld [vmem:[%s783_s30 + $0x18] sm:$0xf] (%p68_p3) }
  0x19   : > { %157 = vst [vmem:[%s131_s3 + $0x8] sm:$0xf] %v156_v2  ;;  %v160_v4 = vld [vmem:[%s783_s30 + $0x20] sm:$0xf]  ;;  %v162_v5 = vld [vmem:[%s783_s30 + $0x28] sm:$0xf] }
  0x1a   : > { %159 = vst [vmem:[%s131_s3 + $0xc] sm:$0xf] %v158_v3  ;;  %161 = vst [vmem:[%s131_s3 + $0x10] sm:$0xf] %v160_v4  ;;  %v164_v6 = vld [vmem:[%s783_s30 + $0x30] sm:$0xf] }
  0x1b   : > { %163 = vst [vmem:[%s131_s3 + $0x14] sm:$0xf] %v162_v5  ;;  %v166_v7 = vld [vmem:[%s783_s30 + $0x38] sm:$0xf]  ;;  %v168_v8 = vld [vmem:[%s783_s30 + $0x40] sm:$0xf] }
  0x1c   : > { %165 = vst [vmem:[%s131_s3 + $0x18] sm:$0xf] %v164_v6  ;;  %167 = vst [vmem:[%s131_s3 + $0x1c] sm:$0xf] %v166_v7  ;;  %v170_v9 = vld [vmem:[%s783_s30 + $0x48] sm:$0xf] }
  0x1d   : > { %169 = vst [vmem:[%s131_s3 + $0x20] sm:$0xf] %v168_v8  ;;  %v172_v10 = vld [vmem:[%s783_s30 + $0x50] sm:$0xf]  ;;  %v174_v11 = vld [vmem:[%s783_s30 + $0x58] sm:$0xf] }
  0x1e   : > { %171 = vst [vmem:[%s131_s3 + $0x24] sm:$0xf] %v170_v9  ;;  %173 = vst [vmem:[%s131_s3 + $0x28] sm:$0xf] %v172_v10  ;;  %v176_v12 = vld [vmem:[%s783_s30 + $0x60] sm:$0xf] }
  0x1f   : > { %175 = vst [vmem:[%s131_s3 + $0x2c] sm:$0xf] %v174_v11  ;;  %v178_v13 = vld [vmem:[%s783_s30 + $0x68] sm:$0xf]  ;;  %v180_v14 = vld [vmem:[%s783_s30 + $0x70] sm:$0xf] }
  0x20   : > { %177 = vst [vmem:[%s131_s3 + $0x30] sm:$0xf] %v176_v12  ;;  %179 = vst [vmem:[%s131_s3 + $0x34] sm:$0xf] %v178_v13  ;;  %v182_v15 = vld [vmem:[%s783_s30 + $0x78] sm:$0xf] }
  0x21   : > { %181 = vst [vmem:[%s131_s3 + $0x38] sm:$0xf] %v180_v14  ;;  %183 = vst [vmem:[%s131_s3 + $0x3c] sm:$0xf] %v182_v15 }
  0x22 PF: > { %p467_p7 = scmp.ge.s32.totalorder %s702_s15, 1  ;;  %p237_p8 = scmp.lt.s32.totalorder %s702_s15, 5 }
  0x24   : > { %p238_p9 = pnand %p467_p7, %p237_p8 }
  0x25   : > { %s244_s4 = sand.u32 (!%p238_p9), 1, %s678_s9   ;;  %p266_p10 = scmp.lt.s32.totalorder (!%p238_p9), %s686_s11, 1 }
  0x26   : > { %241 = sbr.rel (%p238_p9) target bundleno = 301 (0x12d), region = 65  ;;  %s468_s5 = sshll.u32 (!%p238_p9), %s244_s4, 6 }
  0x27   : > { %p270_p11 = scmp.lt.s32.totalorder (!%p238_p9), %s690_s12, 1  ;;  %s819_s23 = scalar_lea.vmem (!%p238_p9), [#allocation2], %s468_s5 }
  0x28   : > { %p469_p12 = scmp.ne.s32.totalorder (!%p238_p9), %s686_s11, 0 }
  0x2d   : > { %s807_s6 = scalar_select %p266_p10, %s686_s11, 1 }
  0x2e   : > { %s875_s12 = smov (!%p270_p11, %s690_s12), 1  ;;  %276 = sbr.rel (%p469_p12) target bundleno = 53 (0x35), region = 73 }
  0x2f   : > { %s268_s18 = scalar_lea.vmem %s859_s0, %s807_s6  ;;  %s817_s21 = scalar_lea.vmem %s861_s2, %s875_s12  ;;  %v704_v16 = vmov (!%p469_p12), 0.0  }
  0x30   : > { %277 = vst [vmem:[%s817_s21] sm:$0x1] (!%p469_p12), %v704_v16 }
  0x35 PF: > { %v474_v17 = vld [vmem:[%s819_s23] sm:$0xff]   ;;  %v705_v18 = vmov 0.0|0.0   ;;  %vm706_vm0 = vmmov 0   ;;  %v707_v19 = vmov 0.0   ;;  %v505_v20 = vld [vmem:[%s819_s23 + $0x8] sm:$0xff]   ;;  %v506_v21 = vld [vmem:[%s819_s23 + $0x10] sm:$0xff]  }
  0x36   : > { %564 = vmatprep.subr.bf16.mxu0 %v705_v18  ;;  %561 = vmatprep.mubr.msk.f32.mxu0 %vm706_vm0, %v707_v19  ;;  %v507_v22 = vld [vmem:[%s819_s23 + $0x18] sm:$0xff]   ;;  %v508_v23 = vld [vmem:[%s819_s23 + $0x20] sm:$0xff]   ;;  %v509_v24 = vld [vmem:[%s819_s23 + $0x28] sm:$0xff]  }
  0x37   : > { %566 = vmatpush3.bf16.msra.mxu0 %v474_v17  ;;  %v510_v25 = vld [vmem:[%s819_s23 + $0x30] sm:$0xff]   ;;  %v511_v26 = vld [vmem:[%s819_s23 + $0x38] sm:$0xff]   ;;  %v279_v27 = vld [vmem:[%s268_s18] sm:$0x1] }
  0x38   : > { %567 = vmatprep.subr.bf16.mxu0 %v705_v18  ;;  %v278_v28 = vld [vmem:[%s817_s21] sm:$0x1] }
  0x3b   : > { %569 = vmatpush3.bf16.msra.mxu0 %v505_v20 }
  0x3c   : > { %570 = vmatprep.subr.bf16.mxu0 %v705_v18 }
  0x3f   : > { %572 = vmatpush3.bf16.msra.mxu0 %v506_v21 }
  0x40   : > { %573 = vmatprep.subr.bf16.mxu0 %v705_v18 }
  0x43   : > { %575 = vmatpush3.bf16.msra.mxu0 %v507_v22 }
  0x44   : > { %576 = vmatprep.subr.bf16.mxu0 %v705_v18 }
  0x47   : > { %578 = vmatpush3.bf16.msra.mxu0 %v508_v23 }
  0x48   : > { %579 = vmatprep.subr.bf16.mxu0 %v705_v18 }
  0x4b   : > { %581 = vmatpush3.bf16.msra.mxu0 %v509_v24 }
  0x4c   : > { %582 = vmatprep.subr.bf16.mxu0 %v705_v18 }
  0x4f   : > { %584 = vmatpush3.bf16.msra.mxu0 %v510_v25 }
  0x50   : > { %585 = vmatprep.subr.bf16.mxu0 %v705_v18 }
  0x53   : > { %587 = vmatpush3.bf16.msra.mxu0 %v511_v26 }
  0x56   : > { %562 = vmatmul.mubr.f32.vlgmr.msra.gmra.mrb[0].mxu0 %v279_v27 }
 0x129   : > { %v378_v29 = vpop.f32.mrb[0].mxu0 }
 0x12a   : > { %v382_v30 = vadd.f32 %v378_v29, %v278_v28  ;;  %v563_v31 = vpop.f32.mrb[1].mxu0 }
 0x12c   : > { %383 = vst [vmem:[%s817_s21] sm:$0x1] %v382_v30 }
 0x12d PF: > { %s12_s15 = sadd.s32 1, %s702_s15   ;;  %s862_s9 = smov %s682_s10 }
 0x12e   : > { %p9_p13 = scmp.ge.s32.totalorder %s12_s15, 6   ;;  %s863_s10 = smov %s774_s22 }
 0x12f   : > { %s864_s11 = smov %s694_s13  ;;  %s865_s12 = smov %s698_s14 }
 0x130   : > { %s866_s13 = smov %s869_s16  ;;  %s867_s14 = smov %s873_s17 }
 0x131   :  { %11 = sbr.rel (!%p9_p13) target bundleno = 4 (0x4), region = 111 }

// kernel: iwama_forward.8
= control target key start
LH: loop header
LB: loop body
LE: loop exit
PB: predicated region body
PF: predicated region fallthrough
CT: control target
= control target key end

     0   :  { %s723_s9 = smov 0   ;;  %s725_s10 = smov 0   ;;  %s859_s0 = inlined_call_operand.vmem [shape: f32[1,256], index: 0, kind: input, shape index: {}]   ;;  %s860_s1 = inlined_call_operand.vmem [shape: bf16[256,256], index: 1, kind: input, shape index: {}]   ;;  %s861_s2 = inlined_call_operand.vmem [shape: f32[1,256], index: 2, kind: output, shape index: {}]  }
   0x1   :  { %s727_s11 = smov 0   ;;  %s729_s12 = smov 0  }
   0x2   :  { %s731_s13 = smov 0   ;;  %s733_s14 = smov 0  }
   0x3   :  { %s735_s15 = smov 0  }
   0x4 LB: > { %s21_s16 = sadd.s32 1, %s694_s13  ;;  %s24_s17 = sadd.s32 1, %s698_s14  ;;  %s702_s15 = sphi %s735_s15, %s12_s15   ;;  %s698_s14 = sphi %s733_s14, %s867_s14   ;;  %s694_s13 = sphi %s731_s13, %s866_s13   ;;  %s690_s12 = sphi %s729_s12, %s865_s12   ;;  %s686_s11 = sphi %s727_s11, %s864_s11   ;;  %s682_s10 = sphi %s725_s10, %s863_s10   ;;  %s678_s9 = sphi %s723_s9, %s862_s9  }
   0x5   : > { %p22_p0 = scmp.ge.s32.totalorder %s21_s16, 2  ;;  %p66_p1 = scmp.ne.s32.totalorder %s682_s10, %s678_s9 }
   0x6   : > { %p67_p2 = scmp.eq.s32.totalorder %s702_s15, 0  ;;  %s59_s21 = sadd.s32 1, %s682_s10 }
   0x7   : > { %s869_s16 = smov (%p22_p0, %s21_s16), 0  ;;  %s871_s17 = smov (!%p22_p0, %s24_s17), %s698_s14 }
   0x8   : > { %p68_p3 = por %p67_p2, %p66_p1  ;;  %p26_p4 = scmp.ge.s32.totalorder %s871_s17, 2 }
   0x9   : > { %s55_s18 = ssub.s32 %s694_s13, %s869_s16  ;;  %p462_p6 = scmp.ge.s32.totalorder %s702_s15, 4 }
   0xa   : > { %s873_s17 = smov (%p26_p4, %s871_s17), 0 }
   0xb   : > { %s54_s19 = ssub.s32 %s698_s14, %s873_s17  ;;  %118 = sbr.rel (%p462_p6) target bundleno = 34 (0x22), region = 16 }
   0xc   : > { %s56_s20 = sor.u32 %s55_s18, %s54_s19 }
   0xd   : > { %p57_p5 = scmp.eq.s32.totalorder %s56_s20, 0 }
   0xf   : > { %s774_s22 = scalar_select %p57_p5, %s682_s10, %s59_s21  }
  0x12   : > { %127 = sbr.rel (!%p68_p3) target bundleno = 34 (0x22), region = 24  ;;  %s129_s23 = sand.u32 (%p68_p3), 1, %s682_s10  }
  0x13   : > { %s472_s24 = sshll.u32 (%p68_p3), %s698_s14, 5  ;;  %s463_s25 = sshll.u32 (%p68_p3), %s129_s23, 6 }
  0x14   : > { %s134_s26 = sadd.s32 (%p68_p3), %s694_s13, %s472_s24  ;;  %s131_s3 = scalar_lea.vmem (%p68_p3), [#allocation2], %s463_s25 }
  0x15   : > { %s466_s27 = sshll.u32 (%p68_p3), %s134_s26, 2 }
  0x16   : > { %s783_s30 = scalar_lea.vmem (%p68_p3), %s860_s1, %s466_s27 }
  0x17   : > { %v152_v0 = vld [vmem:[%s783_s30] sm:$0xf] (%p68_p3)  ;;  %v154_v1 = vld [vmem:[%s783_s30 + $0x8] sm:$0xf] (%p68_p3)  ;;  %v156_v2 = vld [vmem:[%s783_s30 + $0x10] sm:$0xf] (%p68_p3) }
  0x18   : > { %153 = vst [vmem:[%s131_s3] sm:$0xf] (%p68_p3), %v152_v0  ;;  %155 = vst [vmem:[%s131_s3 + $0x4] sm:$0xf] (%p68_p3), %v154_v1  ;;  %v158_v3 = vld [vmem:[%s783_s30 + $0x18] sm:$0xf] (%p68_p3) }
  0x19   : > { %157 = vst [vmem:[%s131_s3 + $0x8] sm:$0xf] %v156_v2  ;;  %v160_v4 = vld [vmem:[%s783_s30 + $0x20] sm:$0xf]  ;;  %v162_v5 = vld [vmem:[%s783_s30 + $0x28] sm:$0xf] }
  0x1a   : > { %159 = vst [vmem:[%s131_s3 + $0xc] sm:$0xf] %v158_v3  ;;  %161 = vst [vmem:[%s131_s3 + $0x10] sm:$0xf] %v160_v4  ;;  %v164_v6 = vld [vmem:[%s783_s30 + $0x30] sm:$0xf] }
  0x1b   : > { %163 = vst [vmem:[%s131_s3 + $0x14] sm:$0xf] %v162_v5  ;;  %v166_v7 = vld [vmem:[%s783_s30 + $0x38] sm:$0xf]  ;;  %v168_v8 = vld [vmem:[%s783_s30 + $0x40] sm:$0xf] }
  0x1c   : > { %165 = vst [vmem:[%s131_s3 + $0x18] sm:$0xf] %v164_v6  ;;  %167 = vst [vmem:[%s131_s3 + $0x1c] sm:$0xf] %v166_v7  ;;  %v170_v9 = vld [vmem:[%s783_s30 + $0x48] sm:$0xf] }
  0x1d   : > { %169 = vst [vmem:[%s131_s3 + $0x20] sm:$0xf] %v168_v8  ;;  %v172_v10 = vld [vmem:[%s783_s30 + $0x50] sm:$0xf]  ;;  %v174_v11 = vld [vmem:[%s783_s30 + $0x58] sm:$0xf] }
  0x1e   : > { %171 = vst [vmem:[%s131_s3 + $0x24] sm:$0xf] %v170_v9  ;;  %173 = vst [vmem:[%s131_s3 + $0x28] sm:$0xf] %v172_v10  ;;  %v176_v12 = vld [vmem:[%s783_s30 + $0x60] sm:$0xf] }
  0x1f   : > { %175 = vst [vmem:[%s131_s3 + $0x2c] sm:$0xf] %v174_v11  ;;  %v178_v13 = vld [vmem:[%s783_s30 + $0x68] sm:$0xf]  ;;  %v180_v14 = vld [vmem:[%s783_s30 + $0x70] sm:$0xf] }
  0x20   : > { %177 = vst [vmem:[%s131_s3 + $0x30] sm:$0xf] %v176_v12  ;;  %179 = vst [vmem:[%s131_s3 + $0x34] sm:$0xf] %v178_v13  ;;  %v182_v15 = vld [vmem:[%s783_s30 + $0x78] sm:$0xf] }
  0x21   : > { %181 = vst [vmem:[%s131_s3 + $0x38] sm:$0xf] %v180_v14  ;;  %183 = vst [vmem:[%s131_s3 + $0x3c] sm:$0xf] %v182_v15 }
  0x22 PF: > { %p467_p7 = scmp.ge.s32.totalorder %s702_s15, 1  ;;  %p237_p8 = scmp.lt.s32.totalorder %s702_s15, 5 }
  0x24   : > { %p238_p9 = pnand %p467_p7, %p237_p8 }
  0x25   : > { %s244_s4 = sand.u32 (!%p238_p9), 1, %s678_s9   ;;  %p266_p10 = scmp.lt.s32.totalorder (!%p238_p9), %s686_s11, 1 }
  0x26   : > { %241 = sbr.rel (%p238_p9) target bundleno = 333 (0x14d), region = 65  ;;  %s468_s5 = sshll.u32 (!%p238_p9), %s244_s4, 6 }
  0x27   : > { %p270_p11 = scmp.lt.s32.totalorder (!%p238_p9), %s690_s12, 1  ;;  %s819_s23 = scalar_lea.vmem (!%p238_p9), [#allocation2], %s468_s5 }
  0x28   : > { %p469_p12 = scmp.ne.s32.totalorder (!%p238_p9), %s686_s11, 0 }
  0x2d   : > { %s807_s6 = scalar_select %p266_p10, %s686_s11, 1 }
  0x2e   : > { %s875_s12 = smov (!%p270_p11, %s690_s12), 1  ;;  %276 = sbr.rel (%p469_p12) target bundleno = 53 (0x35), region = 73 }
  0x2f   : > { %s268_s18 = scalar_lea.vmem %s859_s0, %s807_s6  ;;  %s817_s21 = scalar_lea.vmem %s861_s2, %s875_s12  ;;  %v704_v16 = vmov (!%p469_p12), 0.0  }
  0x30   : > { %277 = vst [vmem:[%s817_s21] sm:$0x1] (!%p469_p12), %v704_v16 }
  0x35 PF: > { %v474_v17 = vld [vmem:[%s819_s23] sm:$0xff]   ;;  %v705_v18 = vmov 0.0|0.0   ;;  %vm706_vm0 = vmmov 0   ;;  %v707_v19 = vmov 0.0   ;;  %v505_v20 = vld [vmem:[%s819_s23 + $0x8] sm:$0xff]   ;;  %v506_v21 = vld [vmem:[%s819_s23 + $0x10] sm:$0xff]  }
  0x36   : > { %564 = vmatprep.subr.bf16.mxu0 %v705_v18  ;;  %561 = vmatprep.mubr.msk.f32.mxu0 %vm706_vm0, %v707_v19  ;;  %v507_v22 = vld [vmem:[%s819_s23 + $0x18] sm:$0xff]   ;;  %v508_v23 = vld [vmem:[%s819_s23 + $0x20] sm:$0xff]   ;;  %v509_v24 = vld [vmem:[%s819_s23 + $0x28] sm:$0xff]  }
  0x37   : > { %566 = vmatpush3.bf16.xpose.msra.mxu0 %v474_v17  ;;  %v510_v25 = vld [vmem:[%s819_s23 + $0x30] sm:$0xff]   ;;  %v511_v26 = vld [vmem:[%s819_s23 + $0x38] sm:$0xff]   ;;  %v279_v27 = vld [vmem:[%s268_s18] sm:$0x1] }
  0x38   : > { %567 = vmatprep.subr.bf16.mxu0 %v705_v18  ;;  %v278_v28 = vld [vmem:[%s817_s21] sm:$0x1] }
  0x3f   : > { %569 = vmatpush3.bf16.xpose.msra.mxu0 %v505_v20 }
  0x40   : > { %570 = vmatprep.subr.bf16.mxu0 %v705_v18 }
  0x47   : > { %572 = vmatpush3.bf16.xpose.msra.mxu0 %v506_v21 }
  0x48   : > { %573 = vmatprep.subr.bf16.mxu0 %v705_v18 }
  0x4f   : > { %575 = vmatpush3.bf16.xpose.msra.mxu0 %v507_v22 }
  0x50   : > { %576 = vmatprep.subr.bf16.mxu0 %v705_v18 }
  0x57   : > { %578 = vmatpush3.bf16.xpose.msra.mxu0 %v508_v23 }
  0x58   : > { %579 = vmatprep.subr.bf16.mxu0 %v705_v18 }
  0x5f   : > { %581 = vmatpush3.bf16.xpose.msra.mxu0 %v509_v24 }
  0x60   : > { %582 = vmatprep.subr.bf16.mxu0 %v705_v18 }
  0x67   : > { %584 = vmatpush3.bf16.xpose.msra.mxu0 %v510_v25 }
  0x68   : > { %585 = vmatprep.subr.bf16.mxu0 %v705_v18 }
  0x6f   : > { %587 = vmatpush3.bf16.xpose.msra.mxu0 %v511_v26 }
  0x76   : > { %562 = vmatmul.mubr.f32.vlgmr.msra.gmra.mrb[0].mxu0 %v279_v27 }
 0x149   : > { %v378_v29 = vpop.f32.mrb[0].mxu0 }
 0x14a   : > { %v382_v30 = vadd.f32 %v378_v29, %v278_v28  ;;  %v563_v31 = vpop.f32.mrb[1].mxu0 }
 0x14c   : > { %383 = vst [vmem:[%s817_s21] sm:$0x1] %v382_v30 }
 0x14d PF: > { %s12_s15 = sadd.s32 1, %s702_s15   ;;  %s862_s9 = smov %s682_s10 }
 0x14e   : > { %p9_p13 = scmp.ge.s32.totalorder %s12_s15, 6   ;;  %s863_s10 = smov %s774_s22 }
 0x14f   : > { %s864_s11 = smov %s694_s13  ;;  %s865_s12 = smov %s698_s14 }
 0x150   : > { %s866_s13 = smov %s869_s16  ;;  %s867_s14 = smov %s873_s17 }
 0x151   :  { %11 = sbr.rel (!%p9_p13) target bundleno = 4 (0x4), region = 111 }

// kernel: iwama_forward.9
= control target key start
LH: loop header
LB: loop body
LE: loop exit
PB: predicated region body
PF: predicated region fallthrough
CT: control target
= control target key end

     0   :  { %7 = vsyncpa [#allocation4], 0  ;;  %s1052_s0 = inlined_call_operand.vmem [shape: f32[1,256], index: 0, kind: input, shape index: {}]   ;;  %s1053_s1 = inlined_call_operand.vmem [shape: bf16[256,256], index: 1, kind: input, shape index: {}]   ;;  %s1054_s2 = inlined_call_operand.hbm [shape: f32[1,256], index: 2, kind: output, shape index: {}]  }
   0x1   :  { %9 = vsyncpa [#allocation4 + $0x1], 0  ;;  %s834_s9 = smov 0   ;;  %s836_s10 = smov 0  }
   0x2   :  { %s838_s11 = smov 0   ;;  %s840_s12 = smov 0  }
   0x3   :  { %s842_s13 = smov 0   ;;  %s844_s14 = smov 0  }
   0x4   :  { %s846_s15 = smov 0   ;;  %s848_s16 = smov 0  }
   0x5   :  { %s850_s17 = smov 0   ;;  %s852_s18 = smov 0  }
   0x6 LB: > { %s481_s19 = sadd.s32 4294967295, %s812_s18   ;;  %s482_s20 = sadd.s32 4294967294, %s812_s18   ;;  %s812_s18 = sphi %s852_s18, %s15_s18   ;;  %s808_s17 = sphi %s850_s17, %s1066_s17   ;;  %s804_s16 = sphi %s848_s16, %s1065_s16   ;;  %s800_s15 = sphi %s846_s15, %s1064_s15   ;;  %s796_s14 = sphi %s844_s14, %s1063_s14   ;;  %s792_s13 = sphi %s842_s13, %s1062_s13   ;;  %s788_s12 = sphi %s840_s12, %s1061_s12   ;;  %s784_s11 = sphi %s838_s11, %s1060_s11   ;;  %s780_s10 = sphi %s836_s10, %s1059_s10   ;;  %s776_s9 = sphi %s834_s9, %s1058_s9  }
   0x7   : > { %s24_s21 = sadd.s32 1, %s804_s16  ;;  %s27_s22 = sadd.s32 1, %s808_s17 }
   0x8   : > { %p25_p0 = scmp.ge.s32.totalorder %s24_s21, 2  ;;  %s62_s23 = sadd.s32 1, %s792_s13 }
   0x9   : > { %p69_p1 = scmp.ne.s32.totalorder %s792_s13, %s788_s12  ;;  %p70_p2 = scmp.eq.s32.totalorder %s812_s18, 0 }
   0xa   : > { %s1068_s21 = smov (%p25_p0, %s24_s21), 0  ;;  %s1070_s22 = smov (!%p25_p0, %s27_s22), %s808_s17 }
   0xb   : > { %s58_s24 = ssub.s32 %s804_s16, %s1068_s21  ;;  %p897_p3 = por %p70_p2, %p69_p1 }
   0xc   : > { %p29_p4 = scmp.ge.s32.totalorder %s1070_s22, 2  ;;  %s88_s26 = sadd.s32 1, %s784_s11 }
   0xd   : > { %p98_p5 = scmp.ne.s32.totalorder %s784_s11, %s780_s10  ;;  %p99_p6 = scmp.eq.s32.totalorder %s481_s19, 3 }
   0xe   : > { %s1072_s22 = smov (%p29_p4, %s1070_s22), 0  ;;  %p104_p8 = scmp.ne.s32.totalorder %s780_s10, %s776_s9 }
   0xf   : > { %p906_p7 = por %p99_p6, %p98_p5  ;;  %s57_s28 = ssub.s32 %s808_s17, %s1072_s22 }
  0x10   : > { %p105_p9 = scmp.eq.s32.totalorder %s482_s20, 3  ;;  %s59_s29 = sor.u32 %s58_s24, %s57_s28 }
  0x11   : > { %p86_p10 = scmp.eq.s32.totalorder %s57_s28, 0  ;;  %p60_p11 = scmp.eq.s32.totalorder %s59_s29, 0 }
  0x12   : > { %p914_p12 = por %p105_p9, %p104_p8  ;;  %p484_p13 = scmp.ge.s32.totalorder %s812_s18, 4 }
  0x13   : > { %s919_s3 = scalar_select %p86_p10, %s784_s11, %s88_s26  }
  0x14   : > { %s922_s4 = scalar_select %p60_p11, %s792_s13, %s62_s23  }
  0x15   : > { %121 = sbr.rel (%p484_p13) target bundleno = 44 (0x2c), region = 16 }
  0x1c   : > { %130 = sbr.rel (!%p897_p3) target bundleno = 44 (0x2c), region = 24  ;;  %s132_s5 = sand.u32 (%p897_p3), 1, %s792_s13  }
  0x1d   : > { %s495_s6 = sshll.u32 (%p897_p3), %s808_s17, 5  ;;  %s485_s7 = sshll.u32 (%p897_p3), %s132_s5, 6 }
  0x1e   : > { %s137_s8 = sadd.s32 (%p897_p3), %s804_s16, %s495_s6  ;;  %s134_s23 = scalar_lea.vmem (%p897_p3), [#allocation2], %s485_s7 }
  0x1f   : > { %s488_s19 = sshll.u32 (%p897_p3), %s137_s8, 2 }
  0x20   : > { %s933_s26 = scalar_lea.vmem (%p897_p3), %s1053_s1, %s488_s19 }
  0x21   : > { %v155_v0 = vld [vmem:[%s933_s26] sm:$0xf] (%p897_p3)  ;;  %v157_v1 = vld [vmem:[%s933_s26 + $0x8] sm:$0xf] (%p897_p3)  ;;  %v159_v2 = vld [vmem:[%s933_s26 + $0x10] sm:$0xf] (%p897_p3) }
  0x22   : > { %156 = vst [vmem:[%s134_s23] sm:$0xf] (%p897_p3), %v155_v0  ;;  %158 = vst [vmem:[%s134_s23 + $0x4] sm:$0xf] (%p897_p3), %v157_v1  ;;  %v161_v3 = vld [vmem:[%s933_s26 + $0x18] sm:$0xf] (%p897_p3) }
  0x23   : > { %160 = vst [vmem:[%s134_s23 + $0x8] sm:$0xf] %v159_v2  ;;  %v163_v4 = vld [vmem:[%s933_s26 + $0x20] sm:$0xf]  ;;  %v165_v5 = vld [vmem:[%s933_s26 + $0x28] sm:$0xf] }
  0x24   : > { %162 = vst [vmem:[%s134_s23 + $0xc] sm:$0xf] %v161_v3  ;;  %164 = vst [vmem:[%s134_s23 + $0x10] sm:$0xf] %v163_v4  ;;  %v167_v6 = vld [vmem:[%s933_s26 + $0x30] sm:$0xf] }
  0x25   : > { %166 = vst [vmem:[%s134_s23 + $0x14] sm:$0xf] %v165_v5  ;;  %v169_v7 = vld [vmem:[%s933_s26 + $0x38] sm:$0xf]  ;;  %v171_v8 = vld [vmem:[%s933_s26 + $0x40] sm:$0xf] }
  0x26   : > { %168 = vst [vmem:[%s134_s23 + $0x18] sm:$0xf] %v167_v6  ;;  %170 = vst [vmem:[%s134_s23 + $0x1c] sm:$0xf] %v169_v7  ;;  %v173_v9 = vld [vmem:[%s933_s26 + $0x48] sm:$0xf] }
  0x27   : > { %172 = vst [vmem:[%s134_s23 + $0x20] sm:$0xf] %v171_v8  ;;  %v175_v10 = vld [vmem:[%s933_s26 + $0x50] sm:$0xf]  ;;  %v177_v11 = vld [vmem:[%s933_s26 + $0x58] sm:$0xf] }
  0x28   : > { %174 = vst [vmem:[%s134_s23 + $0x24] sm:$0xf] %v173_v9  ;;  %176 = vst [vmem:[%s134_s23 + $0x28] sm:$0xf] %v175_v10  ;;  %v179_v12 = vld [vmem:[%s933_s26 + $0x60] sm:$0xf] }
  0x29   : > { %178 = vst [vmem:[%s134_s23 + $0x2c] sm:$0xf] %v177_v11  ;;  %v181_v13 = vld [vmem:[%s933_s26 + $0x68] sm:$0xf]  ;;  %v183_v14 = vld [vmem:[%s933_s26 + $0x70] sm:$0xf] }
  0x2a   : > { %180 = vst [vmem:[%s134_s23 + $0x30] sm:$0xf] %v179_v12  ;;  %182 = vst [vmem:[%s134_s23 + $0x34] sm:$0xf] %v181_v13  ;;  %v185_v15 = vld [vmem:[%s933_s26 + $0x78] sm:$0xf] }
  0x2b   : > { %184 = vst [vmem:[%s134_s23 + $0x38] sm:$0xf] %v183_v14  ;;  %186 = vst [vmem:[%s134_s23 + $0x3c] sm:$0xf] %v185_v15 }
  0x2c PF: > { %p489_p0 = scmp.ge.s32.totalorder %s812_s18, 1  ;;  %p240_p1 = scmp.lt.s32.totalorder %s812_s18, 5 }
  0x2e   : > { %p241_p2 = pnand %p489_p0, %p240_p1 }
  0x2f   : > { %s247_s25 = sand.u32 (!%p241_p2), 1, %s788_s12   ;;  %s268_s28 = sand.u32 (!%p241_p2), 1, %s780_s10  }
  0x30   : > { %244 = sbr.rel (%p241_p2) target bundleno = 356 (0x164), region = 65  ;;  %s490_s29 = sshll.u32 (!%p241_p2), %s247_s25, 6 }
  0x31   : > { %p270_p3 = scmp.lt.s32.totalorder (!%p241_p2), %s796_s14, 1  ;;  %s963_s19 = scalar_lea.vmem (!%p241_p2), [#allocation2], %s490_s29 }
  0x32   : > { %s967_s20 = scalar_lea.vmem (!%p241_p2), [#allocation3], %s268_s28  ;;  %p491_p4 = scmp.ne.s32.totalorder (!%p241_p2), %s796_s14, 0 }
  0x37   : > { %s957_s5 = scalar_select %p270_p3, %s796_s14, 1 }
  0x38   : > { %277 = sbr.rel (%p491_p4) target bundleno = 63 (0x3f), region = 73  ;;  %v814_v16 = vmov (!%p491_p4), 0.0  }
  0x39   : > { %s272_s8 = scalar_lea.vmem %s1052_s0, %s957_s5  ;;  %278 = vst [vmem:[%s967_s20] sm:$0x1] (!%p491_p4), %v814_v16 }
  0x3f PF: > { %v497_v17 = vld [vmem:[%s963_s19] sm:$0xff]   ;;  %v815_v18 = vmov 0.0|0.0   ;;  %vm816_vm0 = vmmov 0   ;;  %v817_v19 = vmov 0.0   ;;  %v528_v20 = vld [vmem:[%s963_s19 + $0x8] sm:$0xff]   ;;  %v529_v21 = vld [vmem:[%s963_s19 + $0x10] sm:$0xff]  }
  0x40   : > { %587 = vmatprep.subr.bf16.mxu0 %v815_v18  ;;  %584 = vmatprep.mubr.msk.f32.mxu0 %vm816_vm0, %v817_v19  ;;  %v530_v22 = vld [vmem:[%s963_s19 + $0x18] sm:$0xff]   ;;  %v531_v23 = vld [vmem:[%s963_s19 + $0x20] sm:$0xff]   ;;  %v532_v24 = vld [vmem:[%s963_s19 + $0x28] sm:$0xff]   ;;  %s492_s24 = sshll.u32 %s800_s15, 4  ;;  %s398_s26 = sshll.u32 %s967_s20, 4  ;;  %s992_s26 = int_to_ptr.vmem [resolvable:$true] %s398_s26 }
  0x41   : > { %589 = vmatpush3.bf16.xpose.msra.mxu0 %v497_v17  ;;  %v533_v25 = vld [vmem:[%s963_s19 + $0x30] sm:$0xff]   ;;  %v534_v26 = vld [vmem:[%s963_s19 + $0x38] sm:$0xff]   ;;  %v280_v27 = vld [vmem:[%s272_s8] sm:$0x1]  ;;  %s990_s29 = scalar_lea.hbm %s1054_s2, %s492_s24  ;;  %s386_s5 = scalar_lea.sflag [#allocation4], %s268_s28 }
  0x42   : > { %590 = vmatprep.subr.bf16.mxu0 %v815_v18  ;;  %v279_v28 = vld [vmem:[%s967_s20] sm:$0x1]  ;;  %s702_s6 = scalar_lea.vmem %s992_s26, 16  ;;  %s818_s15 = smov [#allocation3]  }
  0x43   : > { %p703_p5 = scmp.ne.s32.totalorder %s992_s26, %s702_s6  ;;  %s706_s7 = sshll.u32 %s818_s15, 4  ;;  %s707_s7 = int_to_ptr.vmem [resolvable:$false] %s706_s7 }
  0x44   : > { %s708_s8 = scalar_lea.vmem %s707_s7, 32  ;;  %p709_p9 = scmp.lt.s32.totalorder %s992_s26, %s707_s7 }
  0x45   : > { %p704_p6 = pnand %p703_p5, %p906_p7  ;;  %p710_p10 = scmp.lt.s32.totalorder %s708_s8, %s702_s6 }
  0x47   : > { %p705_p8 = pneg %p704_p6  ;;  %p711_p11 = por %p710_p10, %p709_p9 }
  0x49   : > { %592 = vmatpush3.bf16.xpose.msra.mxu0 %v528_v20  ;;  %p712_p13 = pnand %p711_p11, %p705_p8 }
  0x4a   : > { %593 = vmatprep.subr.bf16.mxu0 %v815_v18 }
  0x51   : > { %595 = vmatpush3.bf16.xpose.msra.mxu0 %v529_v21 }
  0x52   : > { %596 = vmatprep.subr.bf16.mxu0 %v815_v18 }
  0x59   : > { %598 = vmatpush3.bf16.xpose.msra.mxu0 %v530_v22 }
  0x5a   : > { %599 = vmatprep.subr.bf16.mxu0 %v815_v18 }
  0x61   : > { %601 = vmatpush3.bf16.xpose.msra.mxu0 %v531_v23 }
  0x62   : > { %602 = vmatprep.subr.bf16.mxu0 %v815_v18 }
  0x69   : > { %604 = vmatpush3.bf16.xpose.msra.mxu0 %v532_v24 }
  0x6a   : > { %605 = vmatprep.subr.bf16.mxu0 %v815_v18 }
  0x71   : > { %607 = vmatpush3.bf16.xpose.msra.mxu0 %v533_v25 }
  0x72   : > { %608 = vmatprep.subr.bf16.mxu0 %v815_v18 }
  0x79   : > { %610 = vmatpush3.bf16.xpose.msra.mxu0 %v534_v26 }
  0x80   : > { %585 = vmatmul.mubr.f32.vlgmr.msra.gmra.mrb[0].mxu0 %v280_v27 }
 0x153   : > { %v379_v29 = vpop.f32.mrb[0].mxu0 }
 0x154   : > { %v383_v30 = vadd.f32 %v379_v29, %v279_v28  ;;  %v586_v31 = vpop.f32.mrb[1].mxu0 }
 0x156   : > { %384 = vst [vmem:[%s967_s20] sm:$0x1] %v383_v30 }
 0x157   : > { %715 = shalt.err (!%p712_p13)
}
 0x158   : > { %s716_s28 = scalar_lea.hbm %s990_s29, 16  ;;  %s720_s12 = scalar_lea.hbm %s1054_s2, 32 }
 0x159   : > { %p717_p0 = scmp.ne.s32.totalorder %s990_s29, %s716_s28  ;;  %p721_p3 = scmp.lt.u32.totalorder %s990_s29, %s1054_s2 }
 0x15a   : > { %p722_p4 = scmp.lt.u32.totalorder %s720_s12, %s716_s28  ;;  %p724_p6 = scmp.lt.u32.totalorder %s716_s28, %s990_s29 }
 0x15b   : > { %p718_p1 = pnand %p717_p0, %p906_p7 }
 0x15c   : > { %p723_p5 = por %p722_p4, %p721_p3 }
 0x15d   : > { %p719_p2 = pneg %p718_p1 }
 0x15e   : > { %p725_p8 = por %p724_p6, %p723_p5 }
 0x160   : > { %p726_p9 = pnand %p725_p8, %p719_p2 }
 0x162   : > { %729 = shalt.err (!%p726_p9)
}
 0x163   : > { %611 = dma.vmem_to_hbm [thread:$0]  (%p906_p7), %s992_s26, 16, %s990_s29, %s386_s5  }
 0x164 PF: > { %p617_p10 = scmp.ge.s32.totalorder %s812_s18, 2  ;;  %s410_s23 = sand.u32 1, %s776_s9  }
 0x165   : > { %s411_s25 = scalar_lea.sflag [#allocation4], %s410_s23 }
 0x166   : > { %p614_p11 = pnand %p617_p10, %p914_p12 }
 0x168   : > { %771 = dma.done.wait (!%p614_p11), %s411_s25, 16  }
 0x169   : > { %773 = vsyncadd (!%p614_p11), %s411_s25, 4294967280  ;;  %s15_s18 = sadd.s32 1, %s812_s18   ;;  %s1058_s9 = smov %s780_s10 }
 0x16a   : > { %p12_p13 = scmp.ge.s32.totalorder %s15_s18, 6   ;;  %s1059_s10 = smov %s784_s11 }
 0x16b   : > { %s1060_s11 = smov %s919_s3  ;;  %s1061_s12 = smov %s792_s13 }
 0x16c   : > { %s1062_s13 = smov %s922_s4  ;;  %s1063_s14 = smov %s804_s16 }
 0x16d   : > { %s1064_s15 = smov %s808_s17  ;;  %s1065_s16 = smov %s1068_s21 }
 0x16e   : > { %s1066_s17 = smov %s1072_s22  ;;  %14 = sbr.rel (!%p12_p13) target bundleno = 6 (0x6), region = 116 }
 0x175   :  { %415 = vsyncpa [#allocation4], 1 }
 0x176   :  { %417 = vsyncpa [#allocation4 + $0x1], 1 }

</bundles_post_ra>
